<compile_context>
chip_gen: v7x
topology: tpu7x:2x2x1
jax: 0.10.0
libtpu: 0.0.40
codegen_flags: <defaults>
</compile_context>

<pallas_src>
import functools

import jax
import jax.numpy as jnp
from jax.experimental import pallas as pl
from jax.experimental.pallas import tpu as pltpu

_MIB = 1024 * 1024


def _round_up(x: int, m: int) -> int:
    return ((x + m - 1) // m) * m


def _cdiv(a: int, b: int) -> int:
    return -(-a // b)


def _vmem_capacity_bytes() -> int:
    """Physical VMEM of the current TPU generation (conservative fallback)."""
    try:
        cap = getattr(pltpu.get_tpu_info(), "vmem_capacity_bytes", None)
        if cap:
            return int(cap)
    except Exception:
        pass
    return 64 * _MIB  # v7x-sized conservative default


def _mlp2_kernel(x_ref, w1_ref, b1_ref, w2_ref, b2_ref, o_ref, h_ref):
    # Layer 1 (bf16 MXU matmul, f32 accumulation; bias + ReLU on the VPU) runs
    # once per batch tile (inner N-tile index j == 0) and is cached in VMEM
    # scratch so it is reused for every output-column tile of this batch tile.
    @pl.when(pl.program_id(1) == 0)
    def _():
        h = jnp.dot(x_ref[...].astype(jnp.bfloat16), w1_ref[...],
                    preferred_element_type=jnp.float32)
        h_ref[...] = jnp.maximum(h + b1_ref[...], 0.0)

    # Layer 2: activations downcast to bf16 for the MXU, f32 accumulation.
    out = jnp.dot(h_ref[...].astype(w2_ref.dtype), w2_ref[...],
                  preferred_element_type=jnp.float32)
    o_ref[...] = (out + b2_ref[...]).astype(o_ref.dtype)


def prepare_params(w1, b1, w2, b2):
    """One-time lane padding (multiples of 128) + bf16 cast of the weights.

    Call once at init and cache the result; keeps the per-call hot path free
    of weight pad/convert HBM passes (biggest single cost in the old version).
    """
    K, H = w1.shape
    N = w2.shape[1]
    K_pad, H_pad, N_pad = _round_up(K, 128), _round_up(H, 128), _round_up(N, 128)
    w1p = jnp.zeros((K_pad, H_pad), jnp.bfloat16).at[:K, :H].set(
        w1.astype(jnp.bfloat16))
    b1p = jnp.zeros((1, H_pad), jnp.float32).at[:, :H].set(
        b1.reshape(1, -1).astype(jnp.float32))
    w2p = jnp.zeros((H_pad, N_pad), jnp.bfloat16).at[:H, :N].set(
        w2.astype(jnp.bfloat16))
    b2p = jnp.zeros((1, N_pad), jnp.float32).at[:, :N].set(
        b2.reshape(1, -1).astype(jnp.float32))
    return w1p, b1p, w2p, b2p


@functools.partial(jax.jit,
                   static_argnames=("num_classes", "batch_tile", "n_tile"))
def fully_connected_forward(x, w1p, b1p, w2p, b2p, *, num_classes,
                            batch_tile=None, n_tile=None):
    """Fused 2-layer MLP forward: ReLU(x @ w1 + b1) @ w2 + b2.

    x            : [B, input_size] (any float dtype)
    w1p,b1p,w2p,b2p : pre-padded params from `prepare_params` (bf16/f32)
    returns [B, num_classes] in x.dtype
    """
    B, K = x.shape
    K_pad, H_pad = w1p.shape
    N_pad = w2p.shape[1]
    out_dtype = x.dtype
    assert w2p.shape[0] == H_pad and b1p.shape == (1, H_pad)
    assert b2p.shape == (1, N_pad)
    assert K <= K_pad and num_classes <= N_pad

    vmem_cap = _vmem_capacity_bytes()
    budget = max(vmem_cap - 16 * _MIB, 32 * _MIB)   # headroom for Mosaic scratch

    # ---- batch tiling ----------------------------------------------------
    # Bigger tiles on 128 MiB parts (v5e/v6e), smaller on v7x (64 MiB); at
    # least 2 batch tiles so both v7x TensorCores get work ("parallel" axis);
    # tile ~ B/ceil(B/tile) rounded to 8 keeps batch padding to < 8 rows/tile.
    if batch_tile is None:
        batch_tile = 512 if vmem_cap >= 96 * _MIB else 256
    n_btiles = max(_cdiv(B, batch_tile), 2 if B >= 16 else 1)
    TB = _round_up(_cdiv(B, n_btiles), 8)

    # ---- explicit VMEM accounting (real buffer counts, no fudge factor) ---
    def est(tb, tn):
        return (2 * tb * K_pad * 4                    # x tile, 2 pipeline bufs (worst-case f32)
                + 2 * tb * tn * out_dtype.itemsize    # out tile, 2 pipeline bufs
                + 2 * K_pad * H_pad * 2               # resident w1 (auto-pipeliner keeps 2 bufs)
                + 2 * H_pad * tn * 2                  # resident w2 tile, 2 bufs
                + 2 * (H_pad + tn) * 4                # biases, 2 bufs
                + tb * H_pad * 4                      # layer-1 activation scratch (f32)
                + tb * (H_pad + tn) * 4)              # f32 matmul results / temporaries

    # ---- output (N) tiling: keep w2 resident when it fits, tile otherwise --
    if n_tile is not None:
        assert n_tile % 128 == 0 and N_pad % n_tile == 0
        TN = n_tile
    else:
        TN = N_pad
        m = N_pad // 128
        for d in sorted((d for d in range(1, m + 1) if m % d == 0), reverse=True):
            TN = 128 * d
            if est(TB, TN) <= budget:
                break
    # Last resort: shrink the batch tile.  (If w1 alone outgrew VMEM a
    # reduction-tiled variant over K/H would be needed; resident-w1 covers
    # practical MLP widths on all generations.)
    while est(TB, TN) > budget and TB > 8:
        TB = max(8, _round_up(TB // 2, 8))

    n_btiles = _cdiv(B, TB)
    B_pad = n_btiles * TB
    nn = N_pad // TN
    vmem_limit = int(min(budget, max(est(TB, TN) * 5 // 4 + 2 * _MIB, 32 * _MIB)))

    # ---- activations: zero-copy when already tile-aligned ------------------
    if B_pad == B and K_pad == K:
        xp = x          # no wrapper pad/cast; bf16 cast happens in-kernel (VPU)
    else:
        xp = jnp.zeros((B_pad, K_pad), jnp.bfloat16).at[:B, :K].set(
            x.astype(jnp.bfloat16))

    # Resident operands (constant / j-only index_maps) are fetched once per
    # block index by the auto-pipeliner; their 2-buffer allocation is fully
    # accounted for in est() so the N-tiling fallback keeps the footprint
    # inside the per-generation VMEM budget.
    out_padded = pl.pallas_call(
        _mlp2_kernel,
        out_shape=jax.ShapeDtypeStruct((B_pad, N_pad), out_dtype),
        grid=(n_btiles, nn),
        in_specs=[
            pl.BlockSpec((TB, K_pad), lambda i, j: (i, 0)),      # x tile (pipelined)
            pl.BlockSpec((K_pad, H_pad), lambda i, j: (0, 0)),   # w1 (resident)
            pl.BlockSpec((1, H_pad), lambda i, j: (0, 0)),       # b1 (resident)
            pl.BlockSpec((H_pad, TN), lambda i, j: (0, j)),      # w2 column tile
            pl.BlockSpec((1, TN), lambda i, j: (0, j)),          # b2 tile
        ],
        out_specs=pl.BlockSpec((TB, TN), lambda i, j: (i, j)),
        scratch_shapes=[pltpu.VMEM((TB, H_pad), jnp.float32)],   # layer-1 acts
        compiler_params=pltpu.CompilerParams(
            dimension_semantics=("parallel", "arbitrary"),
            vmem_limit_bytes=vmem_limit,
        ),
    )(xp, w1p, b1p, w2p, b2p)

    # Slice off batch / lane padding outside the kernel.
    return out_padded[:B, :num_classes]


def init_params(key, input_size, hidden_size, num_classes, dtype=jnp.float32):
    """Mirror nn.Linear's uniform(-1/sqrt(fan_in), 1/sqrt(fan_in)) init."""
    k1, k2, k3, k4 = jax.random.split(key, 4)
    bound1 = 1.0 / jnp.sqrt(jnp.float32(input_size))
    bound2 = 1.0 / jnp.sqrt(jnp.float32(hidden_size))
    w1 = jax.random.uniform(k1, (input_size, hidden_size), dtype, -bound1, bound1)
    b1 = jax.random.uniform(k2, (1, hidden_size), dtype, -bound1, bound1)
    w2 = jax.random.uniform(k3, (hidden_size, num_classes), dtype, -bound2, bound2)
    b2 = jax.random.uniform(k4, (1, num_classes), dtype, -bound2, bound2)
    return w1, b1, w2, b2


if __name__ == "__main__":
    root = jax.random.PRNGKey(0)

    def run_case(case_id, B, input_size, hidden_size, num_classes, **kwargs):
        kx, kp = jax.random.split(jax.random.fold_in(root, case_id))
        x = jax.random.normal(kx, (B, input_size), jnp.float32)
        w1, b1, w2, b2 = init_params(kp, input_size, hidden_size, num_classes)
        params = prepare_params(w1, b1, w2, b2)          # one-time weight prep
        out = fully_connected_forward(x, *params, num_classes=num_classes, **kwargs)
        jax.block_until_ready(out)
        ref = jnp.maximum(x @ w1 + b1, 0.0) @ w2 + b2    # fp32 reference
        assert out.shape == (B, num_classes)
        err = float(jnp.max(jnp.abs(out - ref)))
        assert jnp.allclose(out, ref, atol=1.5e-1, rtol=3e-2), \
            f"case {case_id}: max abs err {err}"

    # Aligned shapes -> zero-copy activation path, 2 batch tiles (megacore).
    run_case(0, B=16, input_size=128, hidden_size=256, num_classes=10)
    # Ragged shapes -> padded activation fallback path.
    run_case(1, B=20, input_size=64, hidden_size=96, num_classes=10)
    # Wide output with forced N tiling -> exercises the layer-1 reuse path.
    run_case(2, B=16, input_size=128, hidden_size=128, num_classes=384, n_tile=128)

    print("KERNEL_OK")
</pallas_src>

<mosaic_0001>
module attributes {stable_mosaic.version = 11 : i64} {
  func.func @_mlp2_kernel(%arg0: i32, %arg1: i32, %arg2: memref<8x128xf32, #tpu.memory_space<vmem>>, %arg3: memref<128x256xbf16, #tpu.memory_space<vmem>>, %arg4: memref<1x256xf32, #tpu.memory_space<vmem>>, %arg5: memref<256x128xbf16, #tpu.memory_space<vmem>>, %arg6: memref<1x128xf32, #tpu.memory_space<vmem>>, %arg7: memref<8x128xf32, #tpu.memory_space<vmem>>, %arg8: memref<8x256xf32, #tpu.memory_space<vmem>>) attributes {dimension_semantics = [#tpu.dimension_semantics<parallel>, #tpu.dimension_semantics<arbitrary>], iteration_bounds = array<i64: 2, 1>, scalar_prefetch = 0 : i64, scratch_operands = 1 : i64, tpu.core_type = #tpu.core_type<tc>, window_params = [{transform_indices = @transform_0, window_bounds = array<i64: 8, 128>}, {pipeline_mode = #tpu.pipeline_mode<synchronous>, transform_indices = @transform_1, window_bounds = array<i64: 128, 256>}, {pipeline_mode = #tpu.pipeline_mode<synchronous>, transform_indices = @transform_2, window_bounds = array<i64: 1, 256>}, {transform_indices = @transform_3, window_bounds = array<i64: 256, 128>}, {transform_indices = @transform_4, window_bounds = array<i64: 1, 128>}, {transform_indices = @transform_5, window_bounds = array<i64: 8, 128>}]} {
    %c0_i32 = arith.constant 0 : i32
    %0 = arith.cmpi eq, %arg1, %c0_i32 : i32
    %1 = arith.extui %0 : i1 to i32
    %c0_i32_0 = arith.constant 0 : i32
    %2 = arith.cmpi ne, %1, %c0_i32_0 : i32
    scf.if %2 {
      %c0_8 = arith.constant 0 : index
      %c0_9 = arith.constant 0 : index
      %11 = vector.load %arg2[%c0_8, %c0_9] : memref<8x128xf32, #tpu.memory_space<vmem>>, vector<8x128xf32>
      %12 = arith.truncf %11 : vector<8x128xf32> to vector<8x128xbf16>
      %c0_10 = arith.constant 0 : index
      %c0_11 = arith.constant 0 : index
      %13 = vector.load %arg3[%c0_10, %c0_11] : memref<128x256xbf16, #tpu.memory_space<vmem>>, vector<128x256xbf16>
      %cst_12 = arith.constant dense<0.000000e+00> : vector<8x256xf32>
      %14 = tpu.matmul %12, %13, %cst_12 {dimension_numbers = #tpu.dot_dimension_numbers<[1], [0], [0], [1], [0, 0, 1, 1], [], []>} : vector<8x128xbf16>, vector<128x256xbf16>, vector<8x256xf32> -> vector<8x256xf32>
      %c0_13 = arith.constant 0 : index
      %c0_14 = arith.constant 0 : index
      %15 = vector.load %arg4[%c0_13, %c0_14] : memref<1x256xf32, #tpu.memory_space<vmem>>, vector<1x256xf32>
      %16 = vector.broadcast %15 : vector<1x256xf32> to vector<8x256xf32>
      %17 = arith.addf %14, %16 : vector<8x256xf32>
      %cst_15 = arith.constant 0.000000e+00 : f32
      %18 = vector.broadcast %cst_15 : f32 to vector<8x256xf32>
      %19 = arith.maximumf %17, %18 : vector<8x256xf32>
      %c0_16 = arith.constant 0 : index
      %c0_17 = arith.constant 0 : index
      %20 = vector.load %arg8[%c0_16, %c0_17] : memref<8x256xf32, #tpu.memory_space<vmem>>, vector<8x256xf32>
      tpu.vector_store %arg8[%c0_16, %c0_17], %19 {strides = array<i32>} : memref<8x256xf32, #tpu.memory_space<vmem>>, vector<8x256xf32>,
    } else {
    }
    %c0 = arith.constant 0 : index
    %c0_1 = arith.constant 0 : index
    %3 = vector.load %arg8[%c0, %c0_1] : memref<8x256xf32, #tpu.memory_space<vmem>>, vector<8x256xf32>
    %4 = arith.truncf %3 : vector<8x256xf32> to vector<8x256xbf16>
    %c0_2 = arith.constant 0 : index
    %c0_3 = arith.constant 0 : index
    %5 = vector.load %arg5[%c0_2, %c0_3] : memref<256x128xbf16, #tpu.memory_space<vmem>>, vector<256x128xbf16>
    %cst = arith.constant dense<0.000000e+00> : vector<8x128xf32>
    %6 = tpu.matmul %4, %5, %cst {dimension_numbers = #tpu.dot_dimension_numbers<[1], [0], [0], [1], [0, 0, 1, 1], [], []>} : vector<8x256xbf16>, vector<256x128xbf16>, vector<8x128xf32> -> vector<8x128xf32>
    %c0_4 = arith.constant 0 : index
    %c0_5 = arith.constant 0 : index
    %7 = vector.load %arg6[%c0_4, %c0_5] : memref<1x128xf32, #tpu.memory_space<vmem>>, vector<1x128xf32>
    %8 = vector.broadcast %7 : vector<1x128xf32> to vector<8x128xf32>
    %9 = arith.addf %6, %8 : vector<8x128xf32>
    %c0_6 = arith.constant 0 : index
    %c0_7 = arith.constant 0 : index
    %10 = vector.load %arg7[%c0_6, %c0_7] : memref<8x128xf32, #tpu.memory_space<vmem>>, vector<8x128xf32>
    tpu.vector_store %arg7[%c0_6, %c0_7], %9 {strides = array<i32>} : memref<8x128xf32, #tpu.memory_space<vmem>>, vector<8x128xf32>,
    return
  }
  func.func @transform_0(%arg0: i32, %arg1: i32) -> (i32, i32) {
    %c0_i32 = arith.constant 0 : i32
    %c0_i32_0 = arith.constant 0 : i32
    return %arg0, %c0_i32 : i32, i32
  }
  func.func @transform_1(%arg0: i32, %arg1: i32) -> (i32, i32) {
    %c0_i32 = arith.constant 0 : i32
    %c0_i32_0 = arith.constant 0 : i32
    %c0_i32_1 = arith.constant 0 : i32
    return %c0_i32, %c0_i32_0 : i32, i32
  }
  func.func @transform_2(%arg0: i32, %arg1: i32) -> (i32, i32) {
    %c0_i32 = arith.constant 0 : i32
    %c0_i32_0 = arith.constant 0 : i32
    %c0_i32_1 = arith.constant 0 : i32
    return %c0_i32, %c0_i32_0 : i32, i32
  }
  func.func @transform_3(%arg0: i32, %arg1: i32) -> (i32, i32) {
    %c0_i32 = arith.constant 0 : i32
    %c0_i32_0 = arith.constant 0 : i32
    return %c0_i32, %arg1 : i32, i32
  }
  func.func @transform_4(%arg0: i32, %arg1: i32) -> (i32, i32) {
    %c0_i32 = arith.constant 0 : i32
    %c0_i32_0 = arith.constant 0 : i32
    return %c0_i32, %arg1 : i32, i32
  }
  func.func @transform_5(%arg0: i32, %arg1: i32) -> (i32, i32) {
    %c0_i32 = arith.constant 0 : i32
    return %arg0, %arg1 : i32, i32
  }
}

</mosaic_0001>

<bundles_post_ra>
// kernel: fully_connected_forward.1
= control target key start
LH: loop header
LB: loop body
LE: loop exit
PB: predicated region body
PF: predicated region fallthrough
CT: control target
= control target key end

     0   :  { %10 = vsyncpa [#allocation4], 0  ;;  %s1448_s0 = inlined_call_operand.hbm [shape: f32[16,128], index: 0, kind: input, shape index: {}]   ;;  %s1449_s1 = inlined_call_operand.hbm [shape: bf16[128,256], index: 1, kind: input, shape index: {}]   ;;  %s1450_s2 = inlined_call_operand.vmem [shape: f32[1,256], index: 2, kind: input, shape index: {}]   ;;  %s1451_s3 = inlined_call_operand.hbm [shape: bf16[256,128], index: 3, kind: input, shape index: {}]   ;;  %s1452_s4 = inlined_call_operand.vmem [shape: f32[1,128], index: 4, kind: input, shape index: {}]   ;;  %s1453_s5 = inlined_call_operand.hbm [shape: f32[16,128], index: 5, kind: output, shape index: {}]  }
   0x1   :  { %12 = vsyncpa [#allocation4 + $0x1], 0 }
   0x2   :  { %13 = vsyncpa [#allocation7], 0 }
   0x3   :  { %14 = vsyncpa [#allocation5], 0 }
   0x4   :  { %16 = vsyncpa [#allocation5 + $0x1], 0  ;;  %s1185_s18 = smov 0   ;;  %s1187_s19 = smov 0  }
   0x5   :  { %s1189_s20 = smov 0   ;;  %s1191_s21 = smov 0  }
   0x6   :  { %s1193_s22 = smov 0   ;;  %s1195_s23 = smov 0  }
   0x7 LB: > { %s771_s24 = sadd.s32 4294967295, %s1144_s23   ;;  %s772_s25 = sadd.s32 4294967294, %s1144_s23   ;;  %s1144_s23 = sphi %s1195_s23, %s22_s23   ;;  %s1140_s22 = sphi %s1193_s22, %s1475_s22   ;;  %s1136_s21 = sphi %s1191_s21, %s1474_s21   ;;  %s1132_s20 = sphi %s1189_s20, %s1473_s20   ;;  %s1128_s19 = sphi %s1187_s19, %s1472_s19   ;;  %s1124_s18 = sphi %s1185_s18, %s1471_s18  }
   0x8   : > { %p54_p0 = scmp.ne.s32.totalorder %s1128_s19, %s1124_s18  ;;  %p1219_p1 = scmp.eq.s32.totalorder %s771_s24, 0 }
   0x9   : > { %p1223_p2 = scmp.eq.s32.totalorder %s771_s24, 1  ;;  %p180_p3 = scmp.eq.s32.totalorder %s772_s25, 1 }
   0xa   : > { %s1458_s26 = scalar_select %p1219_p1, 1, 0 }
   0xb   : > { %p1229_p4 = por %p1219_p1, %p54_p0  ;;  %p773_p5 = scmp.ge.s32.totalorder %s1144_s23, 1 }
   0xc   : > { %p1234_p6 = por %p180_p3, %p54_p0  ;;  %p187_p7 = scmp.lt.s32.totalorder %s1144_s23, 3 }
   0xd   : > { %s1460_s28 = scalar_select %p1229_p4, 1, 0 }
   0xe   : > { %s1461_s29 = scalar_select %p1234_p6, 1, 0 }
   0xf   : > { %p1239_p8 = pnand %p773_p5, %p187_p7  ;;  %s1146_s6 = smov [#allocation6]  }
  0x10   : > { %s199_s7 = sshll.u32 %s1146_s6, 4  ;;  %s1147_s9 = smov [#allocation8]   ;;  %s1243_s7 = int_to_ptr.vmem [resolvable:$true] %s199_s7 }
  0x11   : > { %p856_p9 = pneg %p1239_p8  ;;  %s217_s10 = sshll.u32 %s1147_s9, 4  ;;  %s1254_s10 = int_to_ptr.vmem [resolvable:$true] %s217_s10 }
  0x12   : > { %s972_s13 = scalar_lea.hbm %s1449_s1, 2048 }
  0x13   : > { %p1250_p11 = pnand %p856_p9, %p1219_p1  ;;  %p973_p12 = scmp.ne.s32.totalorder %s1449_s1, %s972_s13 }
  0x14   : > { %p979_p5 = scmp.lt.u32.totalorder %s972_s13, %s1449_s1 }
  0x15   : > { %p974_p13 = pneg %p1250_p11 }
  0x17   : > { %p975_p0 = pnand %p974_p13, %p973_p12 }
  0x19   : > { %p976_p3 = pneg %p975_p0 }
  0x1b   : > { %p981_p7 = pnand %p979_p5, %p976_p3 }
  0x1d   : > { %984 = shalt.err (!%p981_p7)
}
  0x1e   : > { %s985_s24 = scalar_lea.vmem %s1243_s7, 2048  ;;  %p993_p1 = scmp.lt.s32.totalorder %s1243_s7, %s1243_s7 }
  0x1f   : > { %p986_p9 = scmp.ne.s32.totalorder %s1243_s7, %s985_s24  ;;  %p994_p12 = scmp.lt.s32.totalorder %s985_s24, %s985_s24 }
  0x21   : > { %p988_p10 = pnand %p986_p9, %p974_p13  ;;  %p995_p0 = por %p994_p12, %p993_p1 }
  0x23   : > { %p989_p6 = pneg %p988_p10 }
  0x25   : > { %p996_p4 = pnand %p995_p0, %p989_p6 }
  0x27   : > { %999 = shalt.err (!%p996_p4)
}
  0x28   : > { %s1148_s25 = smov 128   ;;  %s1149_s6 = smov 8  }
  0x29   : > { %859 = dma.hbm_to_vmem [thread:$0]  (!%p1250_p11), %s1449_s1, 2048, %s1243_s7, [#allocation7], %s1148_s25, %s1148_s25, %s1149_s6  }
  0x2a   : > { %s1000_s14 = scalar_lea.hbm %s1451_s3, 2048 }
  0x2b   : > { %p1001_p1 = scmp.ne.s32.totalorder %s1451_s3, %s1000_s14  ;;  %p1007_p10 = scmp.lt.u32.totalorder %s1000_s14, %s1451_s3 }
  0x2d   : > { %p1003_p4 = pnand %p1001_p1, %p974_p13 }
  0x2f   : > { %p1004_p6 = pneg %p1003_p4 }
  0x31   : > { %p1009_p3 = pnand %p1007_p10, %p1004_p6 }
  0x33   : > { %1012 = shalt.err (!%p1009_p3)
}
  0x34   : > { %s1013_s7 = scalar_lea.vmem %s1254_s10, 2048  ;;  %p1021_p12 = scmp.lt.s32.totalorder %s1254_s10, %s1254_s10 }
  0x35   : > { %p1014_p5 = scmp.ne.s32.totalorder %s1254_s10, %s1013_s7  ;;  %p1022_p0 = scmp.lt.s32.totalorder %s1013_s7, %s1013_s7 }
  0x37   : > { %p1016_p7 = pnand %p1014_p5, %p974_p13  ;;  %p1023_p1 = por %p1022_p0, %p1021_p12 }
  0x39   : > { %p1017_p9 = pneg %p1016_p7 }
  0x3b   : > { %p1024_p4 = pnand %p1023_p1, %p1017_p9 }
  0x3d   : > { %1027 = shalt.err (!%p1024_p4)
}
  0x3e   : > { %s1150_s25 = smov 64   ;;  %s1151_s6 = smov 4  }
  0x3f   : > { %862 = dma.hbm_to_vmem [thread:$0]  (!%p1250_p11), %s1451_s3, 2048, %s1254_s10, [#allocation7], %s1150_s25, %s1150_s25, %s1151_s6  }
  0x40   : > { %s34_s12 = sadd.s32 1, %s1140_s22  ;;  %s41_s13 = sadd.s32 1, %s1132_s20 }
  0x41   : > { %p36_p13 = scmp.ge.s32.totalorder %s34_s12, 2  ;;  %p48_p6 = scmp.ne.s32.totalorder %s1132_s20, %s1128_s19 }
  0x42   : > { %p49_p10 = scmp.eq.s32.totalorder %s1144_s23, 0  ;;  %p873_p3 = scmp.lt.s32.totalorder %s1144_s23, 2 }
  0x43   : > { %s1477_s12 = smov (%p36_p13, %s34_s12), 0  ;;  %p1318_p7 = por %p1223_p2, %p48_p6 }
  0x44   : > { %p50_p5 = por %p49_p10, %p48_p6  ;;  %s38_s8 = ssub.s32 %s1140_s22, %s1477_s12 }
  0x45   : > { %s1464_s14 = scalar_select %p1318_p7, 1, 0 }
  0x46   : > { %s237_s15 = sand.u32 1, %s1132_s20   ;;  %p39_p9 = scmp.eq.s32.totalorder %s38_s8, 0 }
  0x47   : > { %s778_s10 = sshll.u32 %s237_s15, 3  ;;  %s779_s16 = sshll.u32 %s1140_s22, 7 }
  0x48   : > { %s1327_s17 = scalar_select %p39_p9, %s1132_s20, %s41_s13  }
  0x49   : > { %s1332_s25 = scalar_lea.hbm %s1448_s0, %s779_s16  ;;  %s241_s27 = scalar_lea.vmem [#allocation3], %s778_s10 }
  0x4a   : > { %s248_s6 = sshll.u32 %s241_s27, 4  ;;  %p1336_p2 = pnand %p873_p3, %p50_p5  ;;  %s1340_s6 = int_to_ptr.vmem [resolvable:$true] %s248_s6 }
  0x4b   : > { %s238_s11 = scalar_lea.sflag [#allocation4], %s237_s15  ;;  %s1028_s13 = scalar_lea.hbm %s1332_s25, 128 }
  0x4c   : > { %p1029_p11 = scmp.ne.s32.totalorder %s1332_s25, %s1028_s13  ;;  %p1030_p12 = pneg %p1336_p2 }
  0x4d   : > { %s1033_s16 = scalar_lea.hbm %s1448_s0, 256  ;;  %p1034_p4 = scmp.lt.u32.totalorder %s1332_s25, %s1448_s0 }
  0x4e   : > { %p1031_p0 = pnand %p1030_p12, %p1029_p11  ;;  %p1035_p13 = scmp.lt.u32.totalorder %s1033_s16, %s1028_s13 }
  0x4f   : > { %p1037_p10 = scmp.lt.u32.totalorder %s1028_s13, %s1332_s25 }
  0x50   : > { %p1032_p1 = pneg %p1031_p0  ;;  %p1036_p6 = por %p1035_p13, %p1034_p4 }
  0x52   : > { %p1038_p3 = por %p1037_p10, %p1036_p6 }
  0x54   : > { %p1039_p5 = pnand %p1038_p3, %p1032_p1 }
  0x56   : > { %1042 = shalt.err (!%p1039_p5)
}
  0x57   : > { %s1043_s15 = scalar_lea.vmem %s1340_s6, 128  ;;  %s1152_s27 = smov [#allocation3]  }
  0x58   : > { %p1044_p9 = scmp.ne.s32.totalorder %s1340_s6, %s1043_s15  ;;  %s1048_s8 = sshll.u32 %s1152_s27, 4  ;;  %s1049_s8 = int_to_ptr.vmem [resolvable:$false] %s1048_s8 }
  0x59   : > { %s1050_s10 = scalar_lea.vmem %s1049_s8, 256  ;;  %p1051_p7 = scmp.lt.s32.totalorder %s1340_s6, %s1049_s8 }
  0x5a   : > { %p1046_p11 = pnand %p1044_p9, %p1030_p12  ;;  %p1052_p4 = scmp.lt.s32.totalorder %s1050_s10, %s1043_s15 }
  0x5c   : > { %p1047_p0 = pneg %p1046_p11  ;;  %p1053_p13 = por %p1052_p4, %p1051_p7 }
  0x5e   : > { %p1054_p6 = pnand %p1053_p13, %p1047_p0 }
  0x60   : > { %1057 = shalt.err (!%p1054_p6)
}
  0x61   : > { %866 = dma.hbm_to_vmem [thread:$0]  (!%p1336_p2), %s1332_s25, 128, %s1340_s6, %s238_s11  }
  0x62   : > { %257 = sbr.rel (%p1239_p8) target bundleno = 593 (0x251), region = 40  ;;  %s1370_s13 = sand.u32 (!%p1239_p8), 1, %s1128_s19  }
  0x63   : > { %s781_s16 = sshll.u32 (!%p1239_p8), %s1370_s13, 3  ;;  %s260_s24 = scalar_lea.sflag (!%p1239_p8), [#allocation4], %s1370_s13 }
  0x64   : > { %s1376_s7 = scalar_lea.vmem (!%p1239_p8), [#allocation3], %s781_s16  ;;  %p1466_p7 = scmp.ne.s32.totalorder (!%p1239_p8), %s1460_s28, 0 }
  0x69   : > { %1111 = dma.done.wait (%p1466_p7), %s260_s24, 128  }
  0x6a   : > { %1113 = vsyncadd (%p1466_p7), %s260_s24, 4294967168  ;;  %p1467_p2 = scmp.ne.s32.totalorder %s1458_s26, 0 }
  0x6c   : > { %1115 = dma.done.wait (%p1467_p2), [#allocation7], 4096  }
  0x6d   : > { %1117 = vsyncadd (%p1467_p2), [#allocation7], 4294963200  ;;  %v1153_v0 = vmov 0   ;;  %v932_v1 = vld [vmem:[#allocation6 + $0x4] ss:$8 sps:$4 sm:$0xff]   ;;  %v960_v15 = vld [vmem:[#allocation8 + $0x50] sm:$0xff]   ;;  %v329_v35 = vlaneseq }
  0x6e   : > { %451 = vmatprep.mubr.bf16.mxu0 %v1153_v0  ;;  %v934_v2 = vld [vmem:[#allocation6] ss:$8 sps:$4 sm:$0xff]   ;;  %419 = vmatprep.subr.bf16.mxu0 %v932_v1  ;;  %v935_v3 = vld [vmem:[#allocation6 + $0x14] ss:$8 sps:$4 sm:$0xff]   ;;  %v937_v4 = vld [vmem:[#allocation6 + $0x10] ss:$8 sps:$4 sm:$0xff]  }
  0x6f   : > { %420 = vmatpush1.bf16.msra.mxu0 %v934_v2  ;;  %v938_v5 = vld [vmem:[#allocation6 + $0x24] ss:$8 sps:$4 sm:$0xff]   ;;  %v940_v6 = vld [vmem:[#allocation6 + $0x20] ss:$8 sps:$4 sm:$0xff]   ;;  %v941_v7 = vld [vmem:[#allocation6 + $0x34] ss:$8 sps:$4 sm:$0xff]  }
  0x70   : > { %421 = vmatprep.subr.bf16.mxu0 %v935_v3  ;;  %v943_v8 = vld [vmem:[#allocation6 + $0x30] ss:$8 sps:$4 sm:$0xff]   ;;  %v944_v9 = vld [vmem:[#allocation6 + $0x44] ss:$8 sps:$4 sm:$0xff]   ;;  %v946_v12 = vld [vmem:[#allocation6 + $0x40] ss:$8 sps:$4 sm:$0xff]  }
  0x71   : > { %v956_v10 = vld [vmem:[#allocation8 + $0x40] sm:$0xff]   ;;  %v958_v13 = vld [vmem:[#allocation8 + $0x48] sm:$0xff]   ;;  %v947_v16 = vld [vmem:[#allocation6 + $0x54] ss:$8 sps:$4 sm:$0xff]   ;;  %v330_v36 = vshrl.u32 %v329_v35, 7  ;;  %s819_s6 = sshll.u32 %s1136_s21, 7 }
  0x72   : > { %v957_v11 = vld [vmem:[#allocation8] sm:$0xff]   ;;  %822 = vmatprep.subr.bf16.mxu1 %v956_v10  ;;  %v959_v14 = vld [vmem:[#allocation8 + $0x8] sm:$0xff]   ;;  %v949_v17 = vld [vmem:[#allocation6 + $0x50] ss:$8 sps:$4 sm:$0xff]   ;;  %s300_s9 = scalar_lea.vmem [#allocation9], %s781_s16  ;;  %s1399_s8 = scalar_lea.hbm %s1453_s5, %s819_s6 }
  0x73   : > { %422 = vmatpush1.bf16.msra.mxu0 %v937_v4  ;;  %823 = vmatpush3.bf16.msra.mxu1 %v957_v11  ;;  %v961_v18 = vld [vmem:[#allocation8 + $0x10] sm:$0xff]   ;;  %v962_v19 = vld [vmem:[#allocation8 + $0x58] sm:$0xff]   ;;  %v950_v20 = vld [vmem:[#allocation6 + $0x64] ss:$8 sps:$4 sm:$0xff]   ;;  %v331_v37 = vsub.s32 0, %v330_v36  ;;  %v335_v39 = vsub.s32 1, %v330_v36 }
  0x74   : > { %423 = vmatprep.subr.bf16.mxu0 %v938_v5  ;;  %824 = vmatprep.subr.bf16.mxu1 %v958_v13  ;;  %v952_v21 = vld [vmem:[#allocation6 + $0x60] ss:$8 sps:$4 sm:$0xff]   ;;  %v953_v22 = vld [vmem:[#allocation6 + $0x74] ss:$8 sps:$4 sm:$0xff]   ;;  %v955_v26 = vld [vmem:[#allocation6 + $0x70] ss:$8 sps:$4 sm:$0xff]  }
  0x75   : > { %v963_v23 = vld [vmem:[#allocation8 + $0x18] sm:$0xff]   ;;  %v964_v24 = vld [vmem:[#allocation8 + $0x60] sm:$0xff]   ;;  %v966_v28 = vld [vmem:[#allocation8 + $0x68] sm:$0xff]   ;;  %s659_s11 = sshll.u32 %s300_s9, 4  ;;  %s645_s10 = scalar_lea.sflag [#allocation5], %s1370_s13  ;;  %s1401_s11 = int_to_ptr.vmem [resolvable:$true] %s659_s11 }
  0x76   : > { %v965_v25 = vld [vmem:[#allocation8 + $0x20] sm:$0xff]   ;;  %v309_v27 = vld [vmem:[%s1376_s7] sm:$0xff]  ;;  %v967_v30 = vld [vmem:[#allocation8 + $0x28] sm:$0xff]   ;;  %s1058_s21 = scalar_lea.vmem %s1401_s11, 128  ;;  %p1468_p12 = scmp.ne.s32.totalorder %s1464_s14, 0 }
  0x77   : > { %424 = vmatpush1.bf16.msra.mxu0 %v940_v6  ;;  %825 = vmatpush3.bf16.msra.mxu1 %v959_v14  ;;  %v310_v29 = vpack.c.bf16 %v309_v27, %v309_v27  ;;  %v968_v31 = vld [vmem:[#allocation8 + $0x70] sm:$0xff]   ;;  %v970_v33 = vld [vmem:[#allocation8 + $0x78] sm:$0xff]   ;;  %p1059_p8 = scmp.ne.s32.totalorder %s1401_s11, %s1058_s21  ;;  %s1154_s16 = smov [#allocation9]  }
  0x78   : > { %425 = vmatprep.subr.bf16.mxu0 %v941_v7  ;;  %826 = vmatprep.subr.bf16.mxu1 %v960_v15  ;;  %v969_v32 = vld [vmem:[#allocation8 + $0x30] sm:$0xff]   ;;  %v971_v34 = vld [vmem:[#allocation8 + $0x38] sm:$0xff]   ;;  %s1062_s24 = sshll.u32 %s1154_s16, 4  ;;  %s1063_s24 = int_to_ptr.vmem [resolvable:$false] %s1062_s24 }
  0x79   : > { %v327_v38 = vld [vmem:[%s1450_s2] sm:$0x3]  ;;  %p1060_p1 = pnand %p1059_p8, %p1468_p12  ;;  %s1064_s7 = scalar_lea.vmem %s1063_s24, 256 }
  0x7a   : > { %v332_v40 = vrot.slane %v327_v38, %v331_v37  ;;  %v336_v41 = vrot.slane %v327_v38, %v335_v39  ;;  %v801_v53 = vld [vmem:[%s1452_s4] ss:$0 sm:$0xff]  ;;  %p1065_p3 = scmp.lt.s32.totalorder %s1401_s11, %s1063_s24  ;;  %p1066_p5 = scmp.lt.s32.totalorder %s1064_s7, %s1058_s21 }
  0x7b   : > { %426 = vmatpush1.bf16.msra.mxu0 %v943_v8  ;;  %827 = vmatpush3.bf16.msra.mxu1 %v961_v18  ;;  %p1061_p10 = pneg %p1060_p1 }
  0x7c   : > { %427 = vmatprep.subr.bf16.mxu0 %v944_v9  ;;  %828 = vmatprep.subr.bf16.mxu1 %v962_v19  ;;  %p1067_p9 = por %p1066_p5, %p1065_p3 }
  0x7e   : > { %p1068_p11 = pnand %p1067_p9, %p1061_p10 }
  0x7f   : > { %428 = vmatpush1.bf16.msra.mxu0 %v946_v12  ;;  %829 = vmatpush3.bf16.msra.mxu1 %v963_v23 }
  0x80   : > { %429 = vmatprep.subr.bf16.mxu0 %v947_v16  ;;  %830 = vmatprep.subr.bf16.mxu1 %v964_v24 }
  0x83   : > { %430 = vmatpush1.bf16.msra.mxu0 %v949_v17  ;;  %831 = vmatpush3.bf16.msra.mxu1 %v965_v25 }
  0x84   : > { %431 = vmatprep.subr.bf16.mxu0 %v950_v20  ;;  %832 = vmatprep.subr.bf16.mxu1 %v966_v28 }
  0x87   : > { %432 = vmatpush1.bf16.msra.mxu0 %v952_v21  ;;  %833 = vmatpush3.bf16.msra.mxu1 %v967_v30 }
  0x88   : > { %433 = vmatprep.subr.bf16.mxu0 %v953_v22  ;;  %834 = vmatprep.subr.bf16.mxu1 %v968_v31 }
  0x8b   : > { %434 = vmatpush1.bf16.msra.mxu0 %v955_v26  ;;  %835 = vmatpush3.bf16.msra.mxu1 %v969_v32 }
  0x8c   : > { %836 = vmatprep.subr.bf16.mxu1 %v970_v33 }
  0x8e   : > { %452 = vmatmul.mubr.bf16.vlgmr.msra.gmra.mrb[0].mxu0 %v310_v29 }
  0x8f   : > { %837 = vmatpush3.bf16.msra.mxu1 %v971_v34 }
 0x161   : > { %v453_v42 = vpop.f32.mrb[0].mxu0 }
 0x162   : > { %v454_v43 = vadd.f32 %v453_v42, %v332_v40  ;;  %v455_v44 = vpop.f32.mrb[1].mxu0 }
 0x163   : > { %v456_v45 = vadd.f32 %v455_v44, %v336_v41  ;;  %v457_v46 = vpop.f32.mrb[2].mxu0 }
 0x164   : > { %v460_v47 = vmax.f32 %v454_v43, 0.0  ;;  %v458_v48 = vpop.f32.mrb[3].mxu0 }
 0x165   : > { %v461_v49 = vmax.f32 %v456_v45, 0.0 }
 0x166   : > { %v466_v51 = vpack.c.bf16 %v460_v47, %v460_v47 }
 0x167   : > { %v467_v50 = vpack.c.bf16 %v461_v49, %v461_v49 }
 0x169   : > { %635 = vmatprep.mubr.bf16.mxu1 %v467_v50 }
 0x16a   : > { %636 = vmatmul.mubr.bf16.vlgmr.msra.gmra.mrb[0].mxu1 %v466_v51 }
 0x23d   : > { %v838_v52 = vpop.f32.mrb[0].mxu1 }
 0x23e   : > { %v839_v54 = vpop.f32.mrb[1].mxu1 }
 0x23f   : > { %v840_v55 = vadd.f32 %v839_v54, %v838_v52  ;;  %v841_v56 = vpop.f32.mrb[2].mxu1 }
 0x240   : > { %v842_v57 = vpop.f32.mrb[3].mxu1 }
 0x241   : > { %v638_v58 = vadd.f32 %v840_v55, %v801_v53 }
 0x243   : > { %643 = vst [vmem:[%s300_s9] sm:$0xff] %v638_v58 }
 0x244   : > { %1071 = shalt.err (!%p1068_p11)
}
 0x245   : > { %s1072_s13 = scalar_lea.hbm %s1399_s8, 128  ;;  %s1076_s30 = scalar_lea.hbm %s1453_s5, 256 }
 0x246   : > { %p1073_p0 = scmp.ne.s32.totalorder %s1399_s8, %s1072_s13  ;;  %p1077_p6 = scmp.lt.u32.totalorder %s1399_s8, %s1453_s5 }
 0x247   : > { %p1078_p7 = scmp.lt.u32.totalorder %s1076_s30, %s1072_s13  ;;  %p1080_p8 = scmp.lt.u32.totalorder %s1072_s13, %s1399_s8 }
 0x248   : > { %p1074_p4 = pnand %p1073_p0, %p1468_p12 }
 0x249   : > { %p1079_p2 = por %p1078_p7, %p1077_p6 }
 0x24a   : > { %p1075_p13 = pneg %p1074_p4 }
 0x24b   : > { %p1081_p1 = por %p1080_p8, %p1079_p2 }
 0x24d   : > { %p1082_p10 = pnand %p1081_p1, %p1075_p13 }
 0x24f   : > { %1085 = shalt.err (!%p1082_p10)
}
 0x250   : > { %854 = dma.vmem_to_hbm [thread:$0]  (%p1468_p12), %s1401_s11, 128, %s1399_s8, %s645_s10  }
 0x251 PF: > { %s671_s9 = sand.u32 1, %s1124_s18   ;;  %p1469_p3 = scmp.ne.s32.totalorder %s1461_s29, 0 }
 0x252   : > { %p1470_p5 = scmp.ge.s32.totalorder %s1144_s23, 2  ;;  %s672_s15 = scalar_lea.sflag [#allocation5], %s671_s9 }
 0x254   : > { %p868_p9 = pnand %p1470_p5, %p1469_p3 }
 0x256   : > { %1119 = dma.done.wait (!%p868_p9), %s672_s15, 128  }
 0x257   : > { %1121 = vsyncadd (!%p868_p9), %s672_s15, 4294967168  ;;  %s22_s23 = sadd.s32 1, %s1144_s23   ;;  %s1471_s18 = smov %s1128_s19 }
 0x258   : > { %p19_p11 = scmp.ge.s32.totalorder %s22_s23, 4   ;;  %s1472_s19 = smov %s1132_s20 }
 0x259   : > { %s1473_s20 = smov %s1327_s17  ;;  %s1474_s21 = smov %s1140_s22 }
 0x25a   : > { %s1475_s22 = smov %s1477_s12  ;;  %21 = sbr.rel (!%p19_p11) target bundleno = 7 (0x7), region = 101 }
 0x261   :  { %677 = vsyncpa [#allocation4], 1 }
 0x262   :  { %679 = vsyncpa [#allocation4 + $0x1], 1 }
 0x263   :  { %680 = vsyncpa [#allocation7], 1 }
 0x264   :  { %681 = vsyncpa [#allocation5], 1 }
 0x265   :  { %683 = vsyncpa [#allocation5 + $0x1], 1 }

</bundles_post_ra>
